<compile_context>
chip_gen: v7x
topology: tpu7x:2x2x1
jax: 0.10.0
libtpu: 0.0.40
codegen_flags: <defaults>
</compile_context>

<pallas_src>
import functools

import jax
import jax.numpy as jnp
from jax.experimental import pallas as pl
from jax.experimental.pallas import tpu as pltpu

NEG_SLOPE = 0.01   # nn.LeakyReLU() default
LN_EPS = 1e-5      # nn.LayerNorm default
LANE = 128
SUBLANE = 8


def _round_up(x, m):
    return ((x + m - 1) // m) * m


def _pad2(a, rows, cols):
    return jnp.pad(a, ((0, rows - a.shape[0]), (0, cols - a.shape[1])))


# ----------------------------- fused kernel ----------------------------------
def _build_fused_kernel(n_layers, hidden_size):
    """Kernel over one row tile: all layers executed back-to-back in VMEM.

    Ref order: x, [w, b, g, beta] * n_layers, w_out, b_out, o_ref
    """

    def kernel(*refs):
        x_ref = refs[0]
        hid = refs[1:1 + 4 * n_layers]
        w_out_ref = refs[1 + 4 * n_layers]
        b_out_ref = refs[2 + 4 * n_layers]
        o_ref = refs[3 + 4 * n_layers]

        h_p = hid[1].shape[-1]  # padded hidden width (multiple of 128)
        # Lane mask so LayerNorm stats ignore the zero-padded feature lanes.
        lane = jax.lax.broadcasted_iota(jnp.int32, (1, h_p), 1)
        valid = (lane < hidden_size).astype(jnp.float32)
        inv_h = jnp.float32(1.0 / hidden_size)

        h = x_ref[...]  # bf16, (tile_rows, in_p)
        for l in range(n_layers):
            w_ref, b_ref, g_ref, beta_ref = hid[4 * l:4 * l + 4]
            # Linear (bf16 MXU matmul, f32 accumulate). Padded W columns are
            # zero, so padded output lanes are exactly 0 before masking.
            y = jnp.dot(h, w_ref[...], preferred_element_type=jnp.float32)
            y = y + b_ref[...]
            # LayerNorm over the real hidden_size features (biased variance,
            # eps inside rsqrt -- matches torch.nn.LayerNorm).
            mean = jnp.sum(y, axis=-1, keepdims=True) * inv_h
            c = (y - mean) * valid
            var = jnp.sum(c * c, axis=-1, keepdims=True) * inv_h
            y = c * jax.lax.rsqrt(var + LN_EPS)
            y = y * g_ref[...] + beta_ref[...]   # padded gamma/beta are 0
            # LeakyReLU
            y = jnp.where(y >= 0, y, NEG_SLOPE * y)
            h = y.astype(jnp.bfloat16)

        y = jnp.dot(h, w_out_ref[...], preferred_element_type=jnp.float32)
        y = y + b_out_ref[...]
        o_ref[...] = jax.nn.sigmoid(y).astype(o_ref.dtype)

    return kernel


# ----------------------------- wrapper ----------------------------------------
@functools.partial(jax.jit, static_argnames=("tile_rows",))
def amp_block_forward(params, x, *, tile_rows=512):
    """x: (..., in_size) -> (..., output_size)."""
    lead_shape = x.shape[:-1]
    in_size = x.shape[-1]
    hidden = params["hidden"]
    n_layers = len(hidden)
    hidden_size = hidden[0][0].shape[1]
    output_size = params["out"][0].shape[1]

    in_p = _round_up(in_size, LANE)
    h_p = _round_up(hidden_size, LANE)
    out_p = _round_up(output_size, LANE)

    rows = 1
    for d in lead_shape:
        rows *= d
    x2 = x.reshape(rows, in_size).astype(jnp.float32)

    # Row tile: big by default (>=512 knee), clamped for tiny inputs, padded
    # so the grid covers the rows exactly (no divisibility assert).
    tr = min(_round_up(tile_rows, SUBLANE), _round_up(rows, SUBLANE))
    rows_p = _round_up(rows, tr)
    grid = (rows_p // tr,)

    # Zero-pad input rows/features; cast matmul operand to bf16.
    x_p = jnp.pad(x2, ((0, rows_p - rows), (0, in_p - in_size)))
    x_p = x_p.astype(jnp.bfloat16)

    # Zero-pad all layer parameters to lane-dense shapes (weights -> bf16,
    # bias/gamma/beta stay f32 for the elementwise path).
    mats = []
    prev_p = in_p
    for (w, b, g, beta) in hidden:
        mats.append(_pad2(w, prev_p, h_p).astype(jnp.bfloat16))
        mats.append(_pad2(b, 1, h_p).astype(jnp.float32))
        mats.append(_pad2(g, 1, h_p).astype(jnp.float32))
        mats.append(_pad2(beta, 1, h_p).astype(jnp.float32))
        prev_p = h_p
    w_out, b_out = params["out"]
    mats.append(_pad2(w_out, h_p, out_p).astype(jnp.bfloat16))
    mats.append(_pad2(b_out, 1, out_p).astype(jnp.float32))

    in_specs = [pl.BlockSpec((tr, in_p), lambda i: (i, 0))]
    for m in mats:
        # Broadcast operands: same (full) block every grid step.
        in_specs.append(pl.BlockSpec(m.shape, lambda i: (0, 0)))

    kernel = _build_fused_kernel(n_layers, hidden_size)

    out = pl.pallas_call(
        kernel,
        out_shape=jax.ShapeDtypeStruct((rows_p, out_p), jnp.float32),
        grid_spec=pltpu.PrefetchScalarGridSpec(
            num_scalar_prefetch=0,
            grid=grid,
            in_specs=in_specs,
            out_specs=pl.BlockSpec((tr, out_p), lambda i: (i, 0)),
        ),
        compiler_params=pltpu.CompilerParams(
            dimension_semantics=("parallel",)),
    )(x_p, *mats)

    out = out[:rows, :output_size]
    return out.reshape(*lead_shape, output_size)


# ----------------------------- init ------------------------------------------
def init_amp_block_params(key, in_size, hidden_size, n_layers, output_size):
    """Mirrors nn.Linear (uniform +-1/sqrt(fan_in)) and nn.LayerNorm
    (gamma=1, beta=0). Weights stored as (in, out)."""
    channels = [in_size] + n_layers * [hidden_size]
    params = {"hidden": [], "out": None}
    for i in range(n_layers):
        key, kw, kb = jax.random.split(key, 3)
        fan_in, fan_out = channels[i], channels[i + 1]
        bound = 1.0 / jnp.sqrt(fan_in)
        w = jax.random.uniform(kw, (fan_in, fan_out), jnp.float32, -bound, bound)
        b = jax.random.uniform(kb, (1, fan_out), jnp.float32, -bound, bound)
        g = jnp.ones((1, fan_out), jnp.float32)
        beta = jnp.zeros((1, fan_out), jnp.float32)
        params["hidden"].append((w, b, g, beta))
    key, kw, kb = jax.random.split(key, 3)
    fan_in = channels[-1]
    bound = 1.0 / jnp.sqrt(fan_in)
    w = jax.random.uniform(kw, (fan_in, output_size), jnp.float32, -bound, bound)
    b = jax.random.uniform(kb, (1, output_size), jnp.float32, -bound, bound)
    params["out"] = (w, b)
    return params


# ----------------------------- reference -------------------------------------
def amp_block_reference(params, x):
    h = x.reshape(-1, x.shape[-1]).astype(jnp.float32)
    for (w, b, g, beta) in params["hidden"]:
        y = h @ w + b
        mean = jnp.mean(y, axis=-1, keepdims=True)
        var = jnp.mean((y - mean) ** 2, axis=-1, keepdims=True)
        y = (y - mean) / jnp.sqrt(var + LN_EPS)
        y = y * g + beta
        h = jnp.where(y >= 0, y, NEG_SLOPE * y)
    w, b = params["out"]
    h = jax.nn.sigmoid(h @ w + b)
    return h.reshape(*x.shape[:-1], h.shape[-1])


if __name__ == "__main__":
    in_size, hidden_size, n_layers, output_size = 16, 32, 3, 8
    batch, seq = 2, 8

    key = jax.random.PRNGKey(0)
    kp, kx = jax.random.split(key)
    params = init_amp_block_params(kp, in_size, hidden_size, n_layers,
                                   output_size)
    x = jax.random.normal(kx, (batch, seq, in_size), jnp.float32)

    out = amp_block_forward(params, x)
    out = jax.block_until_ready(out)

    ref = amp_block_reference(params, x)
    assert out.shape == (batch, seq, output_size)
    # Matmuls run in bf16 on the MXU (f32 accumulate); post-sigmoid outputs
    # agree with the f32 reference to well under 3e-2 absolute.
    assert jnp.allclose(out, ref, atol=3e-2, rtol=0.0)
    print("KERNEL_OK")
</pallas_src>

<mosaic_0001>
module attributes {stable_mosaic.version = 11 : i64} {
  func.func @kernel(%arg0: i32, %arg1: memref<16x128xbf16, #tpu.memory_space<vmem>>, %arg2: memref<128x128xbf16, #tpu.memory_space<vmem>>, %arg3: memref<1x128xf32, #tpu.memory_space<vmem>>, %arg4: memref<1x128xf32, #tpu.memory_space<vmem>>, %arg5: memref<1x128xf32, #tpu.memory_space<vmem>>, %arg6: memref<128x128xbf16, #tpu.memory_space<vmem>>, %arg7: memref<1x128xf32, #tpu.memory_space<vmem>>, %arg8: memref<1x128xf32, #tpu.memory_space<vmem>>, %arg9: memref<1x128xf32, #tpu.memory_space<vmem>>, %arg10: memref<128x128xbf16, #tpu.memory_space<vmem>>, %arg11: memref<1x128xf32, #tpu.memory_space<vmem>>, %arg12: memref<1x128xf32, #tpu.memory_space<vmem>>, %arg13: memref<1x128xf32, #tpu.memory_space<vmem>>, %arg14: memref<128x128xbf16, #tpu.memory_space<vmem>>, %arg15: memref<1x128xf32, #tpu.memory_space<vmem>>, %arg16: memref<16x128xf32, #tpu.memory_space<vmem>>) attributes {dimension_semantics = [#tpu.dimension_semantics<parallel>], iteration_bounds = array<i64: 1>, scalar_prefetch = 0 : i64, scratch_operands = 0 : i64, tpu.core_type = #tpu.core_type<tc>, window_params = [{transform_indices = @transform_0, window_bounds = array<i64: 16, 128>}, {pipeline_mode = #tpu.pipeline_mode<synchronous>, transform_indices = @transform_1, window_bounds = array<i64: 128, 128>}, {pipeline_mode = #tpu.pipeline_mode<synchronous>, transform_indices = @transform_2, window_bounds = array<i64: 1, 128>}, {pipeline_mode = #tpu.pipeline_mode<synchronous>, transform_indices = @transform_3, window_bounds = array<i64: 1, 128>}, {pipeline_mode = #tpu.pipeline_mode<synchronous>, transform_indices = @transform_4, window_bounds = array<i64: 1, 128>}, {pipeline_mode = #tpu.pipeline_mode<synchronous>, transform_indices = @transform_5, window_bounds = array<i64: 128, 128>}, {pipeline_mode = #tpu.pipeline_mode<synchronous>, transform_indices = @transform_6, window_bounds = array<i64: 1, 128>}, {pipeline_mode = #tpu.pipeline_mode<synchronous>, transform_indices = @transform_7, window_bounds = array<i64: 1, 128>}, {pipeline_mode = #tpu.pipeline_mode<synchronous>, transform_indices = @transform_8, window_bounds = array<i64: 1, 128>}, {pipeline_mode = #tpu.pipeline_mode<synchronous>, transform_indices = @transform_9, window_bounds = array<i64: 128, 128>}, {pipeline_mode = #tpu.pipeline_mode<synchronous>, transform_indices = @transform_10, window_bounds = array<i64: 1, 128>}, {pipeline_mode = #tpu.pipeline_mode<synchronous>, transform_indices = @transform_11, window_bounds = array<i64: 1, 128>}, {pipeline_mode = #tpu.pipeline_mode<synchronous>, transform_indices = @transform_12, window_bounds = array<i64: 1, 128>}, {pipeline_mode = #tpu.pipeline_mode<synchronous>, transform_indices = @transform_13, window_bounds = array<i64: 128, 128>}, {pipeline_mode = #tpu.pipeline_mode<synchronous>, transform_indices = @transform_14, window_bounds = array<i64: 1, 128>}, {transform_indices = @transform_15, window_bounds = array<i64: 16, 128>}]} {
    %0 = tpu.iota {dimensions = array<i32: 1>} : vector<1x128xi32>
    %c32_i32 = arith.constant 32 : i32
    %1 = vector.broadcast %c32_i32 : i32 to vector<1x128xi32>
    %2 = arith.cmpi slt, %0, %1 : vector<1x128xi32>
    %3 = arith.extui %2 : vector<1x128xi1> to vector<1x128xi32>
    %4 = arith.sitofp %3 : vector<1x128xi32> to vector<1x128xf32>
    %c0 = arith.constant 0 : index
    %c0_0 = arith.constant 0 : index
    %5 = vector.load %arg1[%c0, %c0_0] : memref<16x128xbf16, #tpu.memory_space<vmem>>, vector<16x128xbf16>
    %c0_1 = arith.constant 0 : index
    %c0_2 = arith.constant 0 : index
    %6 = vector.load %arg2[%c0_1, %c0_2] : memref<128x128xbf16, #tpu.memory_space<vmem>>, vector<128x128xbf16>
    %cst = arith.constant dense<0.000000e+00> : vector<16x128xf32>
    %7 = tpu.matmul %5, %6, %cst {dimension_numbers = #tpu.dot_dimension_numbers<[1], [0], [0], [1], [0, 0, 1, 1], [], []>} : vector<16x128xbf16>, vector<128x128xbf16>, vector<16x128xf32> -> vector<16x128xf32>
    %c0_3 = arith.constant 0 : index
    %c0_4 = arith.constant 0 : index
    %8 = vector.load %arg3[%c0_3, %c0_4] : memref<1x128xf32, #tpu.memory_space<vmem>>, vector<1x128xf32>
    %9 = vector.broadcast %8 : vector<1x128xf32> to vector<16x128xf32>
    %10 = arith.addf %7, %9 : vector<16x128xf32>
    %cst_5 = arith.constant dense<0.000000e+00> : vector<16xf32>
    %11 = vector.multi_reduction <add>, %10, %cst_5 [1] : vector<16x128xf32> to vector<16xf32>
    %12 = vector.shape_cast %11 : vector<16xf32> to vector<16x1xf32>
    %cst_6 = arith.constant 3.125000e-02 : f32
    %13 = vector.broadcast %cst_6 : f32 to vector<16x1xf32>
    %14 = arith.mulf %12, %13 : vector<16x1xf32>
    %15 = vector.broadcast %14 : vector<16x1xf32> to vector<16x128xf32>
    %16 = arith.subf %10, %15 : vector<16x128xf32>
    %17 = vector.broadcast %4 : vector<1x128xf32> to vector<16x128xf32>
    %18 = arith.mulf %16, %17 : vector<16x128xf32>
    %19 = arith.mulf %18, %18 : vector<16x128xf32>
    %cst_7 = arith.constant dense<0.000000e+00> : vector<16xf32>
    %20 = vector.multi_reduction <add>, %19, %cst_7 [1] : vector<16x128xf32> to vector<16xf32>
    %21 = vector.shape_cast %20 : vector<16xf32> to vector<16x1xf32>
    %cst_8 = arith.constant 3.125000e-02 : f32
    %22 = vector.broadcast %cst_8 : f32 to vector<16x1xf32>
    %23 = arith.mulf %21, %22 : vector<16x1xf32>
    %cst_9 = arith.constant 9.99999974E-6 : f32
    %24 = vector.broadcast %cst_9 : f32 to vector<16x1xf32>
    %25 = arith.addf %23, %24 : vector<16x1xf32>
    %26 = math.rsqrt %25 : vector<16x1xf32>
    %27 = vector.broadcast %26 : vector<16x1xf32> to vector<16x128xf32>
    %28 = arith.mulf %18, %27 : vector<16x128xf32>
    %c0_10 = arith.constant 0 : index
    %c0_11 = arith.constant 0 : index
    %29 = vector.load %arg4[%c0_10, %c0_11] : memref<1x128xf32, #tpu.memory_space<vmem>>, vector<1x128xf32>
    %30 = vector.broadcast %29 : vector<1x128xf32> to vector<16x128xf32>
    %31 = arith.mulf %28, %30 : vector<16x128xf32>
    %c0_12 = arith.constant 0 : index
    %c0_13 = arith.constant 0 : index
    %32 = vector.load %arg5[%c0_12, %c0_13] : memref<1x128xf32, #tpu.memory_space<vmem>>, vector<1x128xf32>
    %33 = vector.broadcast %32 : vector<1x128xf32> to vector<16x128xf32>
    %34 = arith.addf %31, %33 : vector<16x128xf32>
    %cst_14 = arith.constant 0.000000e+00 : f32
    %35 = vector.broadcast %cst_14 : f32 to vector<16x128xf32>
    %36 = arith.cmpf oge, %34, %35 : vector<16x128xf32>
    %cst_15 = arith.constant 0.00999999977 : f32
    %37 = vector.broadcast %cst_15 : f32 to vector<16x128xf32>
    %38 = arith.mulf %37, %34 : vector<16x128xf32>
    %39 = arith.select %36, %34, %38 : vector<16x128xi1>, vector<16x128xf32>
    %40 = arith.truncf %39 : vector<16x128xf32> to vector<16x128xbf16>
    %c0_16 = arith.constant 0 : index
    %c0_17 = arith.constant 0 : index
    %41 = vector.load %arg6[%c0_16, %c0_17] : memref<128x128xbf16, #tpu.memory_space<vmem>>, vector<128x128xbf16>
    %cst_18 = arith.constant dense<0.000000e+00> : vector<16x128xf32>
    %42 = tpu.matmul %40, %41, %cst_18 {dimension_numbers = #tpu.dot_dimension_numbers<[1], [0], [0], [1], [0, 0, 1, 1], [], []>} : vector<16x128xbf16>, vector<128x128xbf16>, vector<16x128xf32> -> vector<16x128xf32>
    %c0_19 = arith.constant 0 : index
    %c0_20 = arith.constant 0 : index
    %43 = vector.load %arg7[%c0_19, %c0_20] : memref<1x128xf32, #tpu.memory_space<vmem>>, vector<1x128xf32>
    %44 = vector.broadcast %43 : vector<1x128xf32> to vector<16x128xf32>
    %45 = arith.addf %42, %44 : vector<16x128xf32>
    %cst_21 = arith.constant dense<0.000000e+00> : vector<16xf32>
    %46 = vector.multi_reduction <add>, %45, %cst_21 [1] : vector<16x128xf32> to vector<16xf32>
    %47 = vector.shape_cast %46 : vector<16xf32> to vector<16x1xf32>
    %cst_22 = arith.constant 3.125000e-02 : f32
    %48 = vector.broadcast %cst_22 : f32 to vector<16x1xf32>
    %49 = arith.mulf %47, %48 : vector<16x1xf32>
    %50 = vector.broadcast %49 : vector<16x1xf32> to vector<16x128xf32>
    %51 = arith.subf %45, %50 : vector<16x128xf32>
    %52 = vector.broadcast %4 : vector<1x128xf32> to vector<16x128xf32>
    %53 = arith.mulf %51, %52 : vector<16x128xf32>
    %54 = arith.mulf %53, %53 : vector<16x128xf32>
    %cst_23 = arith.constant dense<0.000000e+00> : vector<16xf32>
    %55 = vector.multi_reduction <add>, %54, %cst_23 [1] : vector<16x128xf32> to vector<16xf32>
    %56 = vector.shape_cast %55 : vector<16xf32> to vector<16x1xf32>
    %cst_24 = arith.constant 3.125000e-02 : f32
    %57 = vector.broadcast %cst_24 : f32 to vector<16x1xf32>
    %58 = arith.mulf %56, %57 : vector<16x1xf32>
    %cst_25 = arith.constant 9.99999974E-6 : f32
    %59 = vector.broadcast %cst_25 : f32 to vector<16x1xf32>
    %60 = arith.addf %58, %59 : vector<16x1xf32>
    %61 = math.rsqrt %60 : vector<16x1xf32>
    %62 = vector.broadcast %61 : vector<16x1xf32> to vector<16x128xf32>
    %63 = arith.mulf %53, %62 : vector<16x128xf32>
    %c0_26 = arith.constant 0 : index
    %c0_27 = arith.constant 0 : index
    %64 = vector.load %arg8[%c0_26, %c0_27] : memref<1x128xf32, #tpu.memory_space<vmem>>, vector<1x128xf32>
    %65 = vector.broadcast %64 : vector<1x128xf32> to vector<16x128xf32>
    %66 = arith.mulf %63, %65 : vector<16x128xf32>
    %c0_28 = arith.constant 0 : index
    %c0_29 = arith.constant 0 : index
    %67 = vector.load %arg9[%c0_28, %c0_29] : memref<1x128xf32, #tpu.memory_space<vmem>>, vector<1x128xf32>
    %68 = vector.broadcast %67 : vector<1x128xf32> to vector<16x128xf32>
    %69 = arith.addf %66, %68 : vector<16x128xf32>
    %cst_30 = arith.constant 0.000000e+00 : f32
    %70 = vector.broadcast %cst_30 : f32 to vector<16x128xf32>
    %71 = arith.cmpf oge, %69, %70 : vector<16x128xf32>
    %cst_31 = arith.constant 0.00999999977 : f32
    %72 = vector.broadcast %cst_31 : f32 to vector<16x128xf32>
    %73 = arith.mulf %72, %69 : vector<16x128xf32>
    %74 = arith.select %71, %69, %73 : vector<16x128xi1>, vector<16x128xf32>
    %75 = arith.truncf %74 : vector<16x128xf32> to vector<16x128xbf16>
    %c0_32 = arith.constant 0 : index
    %c0_33 = arith.constant 0 : index
    %76 = vector.load %arg10[%c0_32, %c0_33] : memref<128x128xbf16, #tpu.memory_space<vmem>>, vector<128x128xbf16>
    %cst_34 = arith.constant dense<0.000000e+00> : vector<16x128xf32>
    %77 = tpu.matmul %75, %76, %cst_34 {dimension_numbers = #tpu.dot_dimension_numbers<[1], [0], [0], [1], [0, 0, 1, 1], [], []>} : vector<16x128xbf16>, vector<128x128xbf16>, vector<16x128xf32> -> vector<16x128xf32>
    %c0_35 = arith.constant 0 : index
    %c0_36 = arith.constant 0 : index
    %78 = vector.load %arg11[%c0_35, %c0_36] : memref<1x128xf32, #tpu.memory_space<vmem>>, vector<1x128xf32>
    %79 = vector.broadcast %78 : vector<1x128xf32> to vector<16x128xf32>
    %80 = arith.addf %77, %79 : vector<16x128xf32>
    %cst_37 = arith.constant dense<0.000000e+00> : vector<16xf32>
    %81 = vector.multi_reduction <add>, %80, %cst_37 [1] : vector<16x128xf32> to vector<16xf32>
    %82 = vector.shape_cast %81 : vector<16xf32> to vector<16x1xf32>
    %cst_38 = arith.constant 3.125000e-02 : f32
    %83 = vector.broadcast %cst_38 : f32 to vector<16x1xf32>
    %84 = arith.mulf %82, %83 : vector<16x1xf32>
    %85 = vector.broadcast %84 : vector<16x1xf32> to vector<16x128xf32>
    %86 = arith.subf %80, %85 : vector<16x128xf32>
    %87 = vector.broadcast %4 : vector<1x128xf32> to vector<16x128xf32>
    %88 = arith.mulf %86, %87 : vector<16x128xf32>
    %89 = arith.mulf %88, %88 : vector<16x128xf32>
    %cst_39 = arith.constant dense<0.000000e+00> : vector<16xf32>
    %90 = vector.multi_reduction <add>, %89, %cst_39 [1] : vector<16x128xf32> to vector<16xf32>
    %91 = vector.shape_cast %90 : vector<16xf32> to vector<16x1xf32>
    %cst_40 = arith.constant 3.125000e-02 : f32
    %92 = vector.broadcast %cst_40 : f32 to vector<16x1xf32>
    %93 = arith.mulf %91, %92 : vector<16x1xf32>
    %cst_41 = arith.constant 9.99999974E-6 : f32
    %94 = vector.broadcast %cst_41 : f32 to vector<16x1xf32>
    %95 = arith.addf %93, %94 : vector<16x1xf32>
    %96 = math.rsqrt %95 : vector<16x1xf32>
    %97 = vector.broadcast %96 : vector<16x1xf32> to vector<16x128xf32>
    %98 = arith.mulf %88, %97 : vector<16x128xf32>
    %c0_42 = arith.constant 0 : index
    %c0_43 = arith.constant 0 : index
    %99 = vector.load %arg12[%c0_42, %c0_43] : memref<1x128xf32, #tpu.memory_space<vmem>>, vector<1x128xf32>
    %100 = vector.broadcast %99 : vector<1x128xf32> to vector<16x128xf32>
    %101 = arith.mulf %98, %100 : vector<16x128xf32>
    %c0_44 = arith.constant 0 : index
    %c0_45 = arith.constant 0 : index
    %102 = vector.load %arg13[%c0_44, %c0_45] : memref<1x128xf32, #tpu.memory_space<vmem>>, vector<1x128xf32>
    %103 = vector.broadcast %102 : vector<1x128xf32> to vector<16x128xf32>
    %104 = arith.addf %101, %103 : vector<16x128xf32>
    %cst_46 = arith.constant 0.000000e+00 : f32
    %105 = vector.broadcast %cst_46 : f32 to vector<16x128xf32>
    %106 = arith.cmpf oge, %104, %105 : vector<16x128xf32>
    %cst_47 = arith.constant 0.00999999977 : f32
    %107 = vector.broadcast %cst_47 : f32 to vector<16x128xf32>
    %108 = arith.mulf %107, %104 : vector<16x128xf32>
    %109 = arith.select %106, %104, %108 : vector<16x128xi1>, vector<16x128xf32>
    %110 = arith.truncf %109 : vector<16x128xf32> to vector<16x128xbf16>
    %c0_48 = arith.constant 0 : index
    %c0_49 = arith.constant 0 : index
    %111 = vector.load %arg14[%c0_48, %c0_49] : memref<128x128xbf16, #tpu.memory_space<vmem>>, vector<128x128xbf16>
    %cst_50 = arith.constant dense<0.000000e+00> : vector<16x128xf32>
    %112 = tpu.matmul %110, %111, %cst_50 {dimension_numbers = #tpu.dot_dimension_numbers<[1], [0], [0], [1], [0, 0, 1, 1], [], []>} : vector<16x128xbf16>, vector<128x128xbf16>, vector<16x128xf32> -> vector<16x128xf32>
    %c0_51 = arith.constant 0 : index
    %c0_52 = arith.constant 0 : index
    %113 = vector.load %arg15[%c0_51, %c0_52] : memref<1x128xf32, #tpu.memory_space<vmem>>, vector<1x128xf32>
    %114 = vector.broadcast %113 : vector<1x128xf32> to vector<16x128xf32>
    %115 = arith.addf %112, %114 : vector<16x128xf32>
    %116 = arith.negf %115 : vector<16x128xf32>
    %117 = math.exp %116 : vector<16x128xf32>
    %cst_53 = arith.constant 1.000000e+00 : f32
    %118 = vector.broadcast %cst_53 : f32 to vector<16x128xf32>
    %119 = arith.addf %118, %117 : vector<16x128xf32>
    %120 = arith.divf %118, %119 : vector<16x128xf32>
    %c0_54 = arith.constant 0 : index
    %c0_55 = arith.constant 0 : index
    %121 = vector.load %arg16[%c0_54, %c0_55] : memref<16x128xf32, #tpu.memory_space<vmem>>, vector<16x128xf32>
    tpu.vector_store %arg16[%c0_54, %c0_55], %120 {strides = array<i32>} : memref<16x128xf32, #tpu.memory_space<vmem>>, vector<16x128xf32>,
    return
  }
  func.func @transform_0(%arg0: i32) -> (i32, i32) {
    %c0_i32 = arith.constant 0 : i32
    %c0_i32_0 = arith.constant 0 : i32
    return %arg0, %c0_i32 : i32, i32
  }
  func.func @transform_1(%arg0: i32) -> (i32, i32) {
    %c0_i32 = arith.constant 0 : i32
    %c0_i32_0 = arith.constant 0 : i32
    %c0_i32_1 = arith.constant 0 : i32
    return %c0_i32, %c0_i32_0 : i32, i32
  }
  func.func @transform_2(%arg0: i32) -> (i32, i32) {
    %c0_i32 = arith.constant 0 : i32
    %c0_i32_0 = arith.constant 0 : i32
    %c0_i32_1 = arith.constant 0 : i32
    return %c0_i32, %c0_i32_0 : i32, i32
  }
  func.func @transform_3(%arg0: i32) -> (i32, i32) {
    %c0_i32 = arith.constant 0 : i32
    %c0_i32_0 = arith.constant 0 : i32
    %c0_i32_1 = arith.constant 0 : i32
    return %c0_i32, %c0_i32_0 : i32, i32
  }
  func.func @transform_4(%arg0: i32) -> (i32, i32) {
    %c0_i32 = arith.constant 0 : i32
    %c0_i32_0 = arith.constant 0 : i32
    %c0_i32_1 = arith.constant 0 : i32
    return %c0_i32, %c0_i32_0 : i32, i32
  }
  func.func @transform_5(%arg0: i32) -> (i32, i32) {
    %c0_i32 = arith.constant 0 : i32
    %c0_i32_0 = arith.constant 0 : i32
    %c0_i32_1 = arith.constant 0 : i32
    return %c0_i32, %c0_i32_0 : i32, i32
  }
  func.func @transform_6(%arg0: i32) -> (i32, i32) {
    %c0_i32 = arith.constant 0 : i32
    %c0_i32_0 = arith.constant 0 : i32
    %c0_i32_1 = arith.constant 0 : i32
    return %c0_i32, %c0_i32_0 : i32, i32
  }
  func.func @transform_7(%arg0: i32) -> (i32, i32) {
    %c0_i32 = arith.constant 0 : i32
    %c0_i32_0 = arith.constant 0 : i32
    %c0_i32_1 = arith.constant 0 : i32
    return %c0_i32, %c0_i32_0 : i32, i32
  }
  func.func @transform_8(%arg0: i32) -> (i32, i32) {
    %c0_i32 = arith.constant 0 : i32
    %c0_i32_0 = arith.constant 0 : i32
    %c0_i32_1 = arith.constant 0 : i32
    return %c0_i32, %c0_i32_0 : i32, i32
  }
  func.func @transform_9(%arg0: i32) -> (i32, i32) {
    %c0_i32 = arith.constant 0 : i32
    %c0_i32_0 = arith.constant 0 : i32
    %c0_i32_1 = arith.constant 0 : i32
    return %c0_i32, %c0_i32_0 : i32, i32
  }
  func.func @transform_10(%arg0: i32) -> (i32, i32) {
    %c0_i32 = arith.constant 0 : i32
    %c0_i32_0 = arith.constant 0 : i32
    %c0_i32_1 = arith.constant 0 : i32
    return %c0_i32, %c0_i32_0 : i32, i32
  }
  func.func @transform_11(%arg0: i32) -> (i32, i32) {
    %c0_i32 = arith.constant 0 : i32
    %c0_i32_0 = arith.constant 0 : i32
    %c0_i32_1 = arith.constant 0 : i32
    return %c0_i32, %c0_i32_0 : i32, i32
  }
  func.func @transform_12(%arg0: i32) -> (i32, i32) {
    %c0_i32 = arith.constant 0 : i32
    %c0_i32_0 = arith.constant 0 : i32
    %c0_i32_1 = arith.constant 0 : i32
    return %c0_i32, %c0_i32_0 : i32, i32
  }
  func.func @transform_13(%arg0: i32) -> (i32, i32) {
    %c0_i32 = arith.constant 0 : i32
    %c0_i32_0 = arith.constant 0 : i32
    %c0_i32_1 = arith.constant 0 : i32
    return %c0_i32, %c0_i32_0 : i32, i32
  }
  func.func @transform_14(%arg0: i32) -> (i32, i32) {
    %c0_i32 = arith.constant 0 : i32
    %c0_i32_0 = arith.constant 0 : i32
    %c0_i32_1 = arith.constant 0 : i32
    return %c0_i32, %c0_i32_0 : i32, i32
  }
  func.func @transform_15(%arg0: i32) -> (i32, i32) {
    %c0_i32 = arith.constant 0 : i32
    %c0_i32_0 = arith.constant 0 : i32
    return %arg0, %c0_i32 : i32, i32
  }
}

</mosaic_0001>

<bundles_post_ra>
// kernel: amp_block_forward.1
= control target key start
LH: loop header
LB: loop body
LE: loop exit
PB: predicated region body
PF: predicated region fallthrough
CT: control target
= control target key end

     0   :  { %v894_v0 = vmov 0.0   ;;  %vm895_vm0 = vmmov 0   ;;  %v51_v18 = vlaneseq  ;;  %s1160_s1 = inlined_call_operand.vmem [shape: bf16[128,128], index: 1, kind: input, shape index: {}]   ;;  %s1161_s0 = inlined_call_operand.vmem [shape: bf16[16,128], index: 0, kind: input, shape index: {}]   ;;  %s1162_s2 = inlined_call_operand.vmem [shape: f32[1,128], index: 2, kind: input, shape index: {}]   ;;  %s1163_s5 = inlined_call_operand.vmem [shape: bf16[128,128], index: 5, kind: input, shape index: {}]   ;;  %s1164_s3 = inlined_call_operand.vmem [shape: f32[1,128], index: 3, kind: input, shape index: {}]   ;;  %s1165_s4 = inlined_call_operand.vmem [shape: f32[1,128], index: 4, kind: input, shape index: {}]   ;;  %s1166_s6 = inlined_call_operand.vmem [shape: f32[1,128], index: 6, kind: input, shape index: {}]   ;;  %s1167_s9 = inlined_call_operand.vmem [shape: bf16[128,128], index: 9, kind: input, shape index: {}]   ;;  %s1168_s7 = inlined_call_operand.vmem [shape: f32[1,128], index: 7, kind: input, shape index: {}]   ;;  %s1169_s8 = inlined_call_operand.vmem [shape: f32[1,128], index: 8, kind: input, shape index: {}]   ;;  %s1170_s10 = inlined_call_operand.vmem [shape: f32[1,128], index: 10, kind: input, shape index: {}]   ;;  %s1171_s13 = inlined_call_operand.vmem [shape: bf16[128,128], index: 13, kind: input, shape index: {}]   ;;  %s1172_s11 = inlined_call_operand.vmem [shape: f32[1,128], index: 11, kind: input, shape index: {}]   ;;  %s1173_s12 = inlined_call_operand.vmem [shape: f32[1,128], index: 12, kind: input, shape index: {}]   ;;  %s1174_s14 = inlined_call_operand.vmem [shape: f32[1,128], index: 14, kind: input, shape index: {}]   ;;  %s1175_s15 = inlined_call_operand.vmem [shape: f32[16,128], index: 15, kind: output, shape index: {}]  }
   0x1   :  { %759 = vmatprep.subr.bf16.mxu0 %v894_v0  ;;  %v841_v1 = vld [vmem:[%s1160_s1] sm:$0xff]   ;;  %775 = vmatprep.mubr.msk.bf16.mxu0 %vm895_vm0, %v894_v0  ;;  %v842_v2 = vld [vmem:[%s1160_s1 + $0x8] sm:$0xff]   ;;  %v843_v3 = vld [vmem:[%s1160_s1 + $0x10] sm:$0xff]  }
   0x2   :  { %779 = vmatprep.subr.bf16.mxu1 %v894_v0  ;;  %795 = vmatprep.mubr.msk.bf16.mxu1 %vm895_vm0, %v894_v0  ;;  %v844_v4 = vld [vmem:[%s1160_s1 + $0x18] sm:$0xff]   ;;  %v845_v5 = vld [vmem:[%s1160_s1 + $0x20] sm:$0xff]   ;;  %v846_v6 = vld [vmem:[%s1160_s1 + $0x28] sm:$0xff]   ;;  %v52_v19 = vand.u32 127, %v51_v18 }
   0x3   :  { %760 = vmatpush3.bf16.msra.mxu0 %v841_v1  ;;  %v847_v7 = vld [vmem:[%s1160_s1 + $0x30] sm:$0xff]   ;;  %v848_v8 = vld [vmem:[%s1160_s1 + $0x38] sm:$0xff]   ;;  %v849_v9 = vld [vmem:[%s1161_s0] sm:$0xff]  }
   0x4   :  { %761 = vmatprep.subr.bf16.mxu0 %v894_v0  ;;  %v678_v10 = vld [vmem:[%s1162_s2] ss:$0 sm:$0xff]  ;;  %vm53_vm1 = vcmp.lt.s32.totalorder %v52_v19, 32  ;;  %v851_v31 = vld [vmem:[%s1163_s5 + $0x8] sm:$0xff]   ;;  %v852_v32 = vld [vmem:[%s1163_s5 + $0x10] sm:$0xff]  }
   0x5   :  { %v850_v17 = vld [vmem:[%s1163_s5] sm:$0xff]   ;;  %v1027_v22 = vsel %vm53_vm1, 1.0, %v894_v0  ;;  %v853_v33 = vld [vmem:[%s1163_s5 + $0x18] sm:$0xff]   ;;  %v855_v35 = vld [vmem:[%s1163_s5 + $0x28] sm:$0xff]  }
   0x6   :  { %780 = vmatpush3.bf16.msra.mxu1 %v850_v17  ;;  %v854_v34 = vld [vmem:[%s1163_s5 + $0x20] sm:$0xff]   ;;  %v856_v36 = vld [vmem:[%s1163_s5 + $0x30] sm:$0xff]   ;;  %v857_v37 = vld [vmem:[%s1163_s5 + $0x38] sm:$0xff]  }
   0x7   :  { %762 = vmatpush3.bf16.msra.mxu0 %v842_v2  ;;  %781 = vmatprep.subr.bf16.mxu1 %v894_v0  ;;  %v688_v45 = vld [vmem:[%s1164_s3] ss:$0 sm:$0xff]  ;;  %v863_v18 = vld [vmem:[%s1167_s9 + $0x28] sm:$0xff]   ;;  %v864_v19 = vld [vmem:[%s1167_s9 + $0x30] sm:$0xff]  }
   0x8   :  { %763 = vmatprep.subr.bf16.mxu0 %v894_v0  ;;  %v689_v47 = vld [vmem:[%s1165_s4] ss:$0 sm:$0xff] }
   0x9   :  { %v690_v59 = vld [vmem:[%s1166_s6] ss:$0 sm:$0xff] }
   0xa   :  { %782 = vmatpush3.bf16.msra.mxu1 %v851_v31  ;;  %v862_v17 = vld [vmem:[%s1167_s9 + $0x20] sm:$0xff]  }
   0xb   :  { %764 = vmatpush3.bf16.msra.mxu0 %v843_v3  ;;  %783 = vmatprep.subr.bf16.mxu1 %v894_v0  ;;  %v858_v3 = vld [vmem:[%s1167_s9] sm:$0xff]  }
   0xc   :  { %765 = vmatprep.subr.bf16.mxu0 %v894_v0 }
   0xe   :  { %784 = vmatpush3.bf16.msra.mxu1 %v852_v32  ;;  %v700_v32 = vld [vmem:[%s1169_s8] ss:$0 sm:$0xff] }
   0xf   :  { %766 = vmatpush3.bf16.msra.mxu0 %v844_v4  ;;  %785 = vmatprep.subr.bf16.mxu1 %v894_v0 }
  0x10   :  { %767 = vmatprep.subr.bf16.mxu0 %v894_v0 }
  0x12   :  { %786 = vmatpush3.bf16.msra.mxu1 %v853_v33 }
  0x13   :  { %768 = vmatpush3.bf16.msra.mxu0 %v845_v5  ;;  %787 = vmatprep.subr.bf16.mxu1 %v894_v0 }
  0x14   :  { %769 = vmatprep.subr.bf16.mxu0 %v894_v0 }
  0x16   :  { %788 = vmatpush3.bf16.msra.mxu1 %v854_v34 }
  0x17   :  { %770 = vmatpush3.bf16.msra.mxu0 %v846_v6  ;;  %789 = vmatprep.subr.bf16.mxu1 %v894_v0 }
  0x18   :  { %771 = vmatprep.subr.bf16.mxu0 %v894_v0 }
  0x1a   :  { %790 = vmatpush3.bf16.msra.mxu1 %v855_v35 }
  0x1b   :  { %772 = vmatpush3.bf16.msra.mxu0 %v847_v7  ;;  %791 = vmatprep.subr.bf16.mxu1 %v894_v0 }
  0x1c   :  { %773 = vmatprep.subr.bf16.mxu0 %v894_v0 }
  0x1e   :  { %792 = vmatpush3.bf16.msra.mxu1 %v856_v36 }
  0x1f   :  { %774 = vmatpush3.bf16.msra.mxu0 %v848_v8  ;;  %793 = vmatprep.subr.bf16.mxu1 %v894_v0 }
  0x20   :  { %799 = vmatprep.subr.bf16.mxu0 %v894_v0 }
  0x22   :  { %776 = vmatmul.mubr.bf16.vlgmr.msra.gmra.mrb[0].mxu0 %v849_v9  ;;  %794 = vmatpush3.bf16.msra.mxu1 %v857_v37 }
  0x23   :  { %815 = vmatprep.mubr.msk.bf16.mxu0 %vm895_vm0, %v894_v0  ;;  %819 = vmatprep.subr.bf16.mxu1 %v894_v0 }
  0x24   :  { %800 = vmatpush3.bf16.msra.mxu0 %v858_v3  ;;  %v873_v3 = vld [vmem:[%s1171_s13 + $0x38] sm:$0xff]  }
  0x25   :  { %801 = vmatprep.subr.bf16.mxu0 %v894_v0 }
  0xf5   :  { %v169_v11 = vpop.f32.mrb[0].mxu0 }
  0xf6   :  { %v170_v12 = vadd.f32 %v678_v10, %v169_v11  ;;  %v777_v13 = vpop.f32.mrb[1].mxu0 }
  0xf7   :  { %v172_v14 = vpop.f32.mrb[2].mxu0 }
  0xf8   :  { %176 = vadd.xlane.f32.xlu0 %v170_v12  ;;  %v778_v15 = vpop.f32.mrb[3].mxu0  ;;  %v173_v16 = vadd.f32 %v678_v10, %v172_v14  ;;  %v859_v14 = vld [vmem:[%s1167_s9 + $0x8] sm:$0xff]  }
  0xf9   :  { %802 = vmatpush3.bf16.msra.mxu0 %v859_v14  ;;  %v860_v15 = vld [vmem:[%s1167_s9 + $0x10] sm:$0xff]  }
  0xfa   :  { %803 = vmatprep.subr.bf16.mxu0 %v894_v0 }
  0xfc   :  { %178 = vadd.xlane.f32.xlu0 %v173_v16 }
  0xfd   :  { %804 = vmatpush3.bf16.msra.mxu0 %v860_v15 }
  0xfe   :  { %805 = vmatprep.subr.bf16.mxu0 %v894_v0 }
 0x185   :  { %v177_v20 = vpop.xlane.xlu0 %176 }
 0x186   :  { %v180_v21 = vmul.f32 0.03125, %v177_v20  ;;  %v865_v20 = vld [vmem:[%s1167_s9 + $0x38] sm:$0xff]  }
 0x188   :  { %v182_v23 = vsub.f32 %v170_v12, %v180_v21 }
 0x189   :  { %v179_v24 = vpop.xlane.xlu0 %178 }
 0x18a   :  { %v181_v25 = vmul.f32 0.03125, %v179_v24  ;;  %v184_v26 = vmul.f32 %v1027_v22, %v182_v23 }
 0x18c   :  { %v183_v27 = vsub.f32 %v173_v16, %v181_v25  ;;  %v186_v28 = vmul.f32 %v184_v26, %v184_v26  ;;  %v861_v16 = vld [vmem:[%s1167_s9 + $0x18] sm:$0xff]  }
 0x18d   :  { %806 = vmatpush3.bf16.msra.mxu0 %v861_v16 }
 0x18e   :  { %188 = vadd.xlane.f32.xlu1 %v186_v28  ;;  %v185_v29 = vmul.f32 %v1027_v22, %v183_v27  ;;  %807 = vmatprep.subr.bf16.mxu0 %v894_v0 }
 0x190   :  { %v187_v30 = vmul.f32 %v185_v29, %v185_v29 }
 0x191   :  { %808 = vmatpush3.bf16.msra.mxu0 %v862_v17 }
 0x192   :  { %190 = vadd.xlane.f32.xlu1 %v187_v30  ;;  %809 = vmatprep.subr.bf16.mxu0 %v894_v0 }
 0x195   :  { %810 = vmatpush3.bf16.msra.mxu0 %v863_v18 }
 0x196   :  { %811 = vmatprep.subr.bf16.mxu0 %v894_v0 }
 0x199   :  { %812 = vmatpush3.bf16.msra.mxu0 %v864_v19 }
 0x19a   :  { %813 = vmatprep.subr.bf16.mxu0 %v894_v0 }
 0x19d   :  { %814 = vmatpush3.bf16.msra.mxu0 %v865_v20 }
 0x21b   :  { %v189_v38 = vpop.xlane.xlu1 %188 }
 0x21c   :  { %v192_v39 = vmul.f32 0.03125, %v189_v38 }
 0x21e   :  { %v194_v40 = vadd.f32 1e-05, %v192_v39 }
 0x21f   :  { %v191_v41 = vpop.xlane.xlu1 %190 }
 0x220   :  { %874 = vrsqrt.f32 %v194_v40  ;;  %v193_v42 = vmul.f32 0.03125, %v191_v41 }
 0x222   :  { %v195_v43 = vadd.f32 1e-05, %v193_v42 }
 0x224   :  { %876 = vrsqrt.f32 %v195_v43  ;;  %v701_v43 = vld [vmem:[%s1170_s10] ss:$0 sm:$0xff] }
 0x22a   :  { %v875_v44 = vpop.eup %874 }
 0x22b   :  { %v198_v46 = vmul.f32 %v875_v44, %v184_v26 }
 0x22d   :  { %v207_v48 = vmul.f32 %v688_v45, %v198_v46 }
 0x22e   :  { %v877_v49 = vpop.eup %876 }
 0x22f   :  { %v199_v50 = vmul.f32 %v877_v49, %v185_v29  ;;  %v216_v51 = vadd.f32 %v689_v47, %v207_v48  ;;  %v699_v29 = vld [vmem:[%s1168_s7] ss:$0 sm:$0xff] }
 0x231   :  { %v208_v52 = vmul.f32 %v688_v45, %v199_v50  ;;  %v220_v54 = vmul.f32 0.01, %v216_v51  ;;  %vm218_vm2 = vcmp.ge.f32.partialorder %v216_v51, 0.0  ;;  %v866_v50 = vld [vmem:[%s1171_s13] sm:$0xff]  }
 0x233   :  { %v217_v53 = vadd.f32 %v689_v47, %v208_v52  ;;  %v222_v56 = vsel %vm218_vm2, %v216_v51, %v220_v54 }
 0x235   :  { %vm219_vm3 = vcmp.ge.f32.partialorder %v217_v53, 0.0  ;;  %v221_v55 = vmul.f32 0.01, %v217_v53 }
 0x237   :  { %v223_v57 = vsel %vm219_vm3, %v217_v53, %v221_v55 }
 0x238   :  { %v224_v58 = vpack.c.bf16 %v223_v57, %v222_v56 }
 0x23a   :  { %796 = vmatmul.mubr.bf16.vlgmr.msra.gmra.mrb[0].mxu1 %v224_v58 }
 0x23b   :  { %835 = vmatprep.mubr.msk.bf16.mxu1 %vm895_vm0, %v894_v0  ;;  %820 = vmatpush3.bf16.msra.mxu1 %v866_v50 }
 0x23c   :  { %821 = vmatprep.subr.bf16.mxu1 %v894_v0 }
 0x30d   :  { %v330_v60 = vpop.f32.mrb[0].mxu1 }
 0x30e   :  { %v331_v61 = vadd.f32 %v690_v59, %v330_v60  ;;  %v797_v62 = vpop.f32.mrb[1].mxu1 }
 0x30f   :  { %v333_v63 = vpop.f32.mrb[2].mxu1  ;;  %v868_v62 = vld [vmem:[%s1171_s13 + $0x10] sm:$0xff]  }
 0x310   :  { %v334_v1 = vadd.f32 %v690_v59, %v333_v63  ;;  %337 = vadd.xlane.f32.xlu0 %v331_v61  ;;  %v798_v2 = vpop.f32.mrb[3].mxu1  ;;  %v870_v63 = vld [vmem:[%s1171_s13 + $0x20] sm:$0xff]  }
 0x311   :  { %v872_v2 = vld [vmem:[%s1171_s13 + $0x30] sm:$0xff]  }
 0x312   :  { %339 = vadd.xlane.f32.xlu1 %v334_v1 }
 0x39d   :  { %v338_v4 = vpop.xlane.xlu0 %337 }
 0x39e   :  { %v341_v5 = vmul.f32 0.03125, %v338_v4 }
 0x39f   :  { %v340_v6 = vpop.xlane.xlu1 %339 }
 0x3a0   :  { %v343_v7 = vsub.f32 %v331_v61, %v341_v5  ;;  %v342_v8 = vmul.f32 0.03125, %v340_v6  ;;  %v867_v61 = vld [vmem:[%s1171_s13 + $0x8] sm:$0xff]  }
 0x3a1   :  { %822 = vmatpush3.bf16.msra.mxu1 %v867_v61 }
 0x3a2   :  { %v344_v9 = vsub.f32 %v334_v1, %v342_v8  ;;  %v345_v10 = vmul.f32 %v1027_v22, %v343_v7  ;;  %823 = vmatprep.subr.bf16.mxu1 %v894_v0  ;;  %v871_v1 = vld [vmem:[%s1171_s13 + $0x28] sm:$0xff]  }
 0x3a4   :  { %v347_v11 = vmul.f32 %v345_v10, %v345_v10  ;;  %v346_v12 = vmul.f32 %v1027_v22, %v344_v9 }
 0x3a5   :  { %824 = vmatpush3.bf16.msra.mxu1 %v868_v62 }
 0x3a6   :  { %349 = vadd.xlane.f32.xlu0 %v347_v11  ;;  %v348_v13 = vmul.f32 %v346_v12, %v346_v12  ;;  %825 = vmatprep.subr.bf16.mxu1 %v894_v0  ;;  %v710_v11 = vld [vmem:[%s1172_s11] ss:$0 sm:$0xff] }
 0x3a8   :  { %351 = vadd.xlane.f32.xlu1 %v348_v13 }
 0x433   :  { %v350_v21 = vpop.xlane.xlu0 %349 }
 0x434   :  { %v353_v23 = vmul.f32 0.03125, %v350_v21 }
 0x435   :  { %v352_v24 = vpop.xlane.xlu1 %351 }
 0x436   :  { %v355_v25 = vadd.f32 1e-05, %v353_v23  ;;  %v354_v26 = vmul.f32 0.03125, %v352_v24 }
 0x438   :  { %878 = vrsqrt.f32 %v355_v25  ;;  %v356_v27 = vadd.f32 1e-05, %v354_v26  ;;  %v712_v25 = vld [vmem:[%s1174_s14] ss:$0 sm:$0xff] }
 0x43a   :  { %880 = vrsqrt.f32 %v356_v27 }
 0x442   :  { %v879_v28 = vpop.eup %878 }
 0x443   :  { %v359_v30 = vmul.f32 %v879_v28, %v345_v10 }
 0x444   :  { %v881_v31 = vpop.eup %880 }
 0x445   :  { %v368_v33 = vmul.f32 %v699_v29, %v359_v30  ;;  %v360_v34 = vmul.f32 %v881_v31, %v346_v12 }
 0x447   :  { %v369_v35 = vmul.f32 %v699_v29, %v360_v34  ;;  %v377_v36 = vadd.f32 %v700_v32, %v368_v33 }
 0x449   :  { %v378_v37 = vadd.f32 %v700_v32, %v369_v35  ;;  %v381_v38 = vmul.f32 0.01, %v377_v36  ;;  %vm379_vm4 = vcmp.ge.f32.partialorder %v377_v36, 0.0 }
 0x44b   :  { %vm380_vm5 = vcmp.ge.f32.partialorder %v378_v37, 0.0  ;;  %v382_v39 = vmul.f32 0.01, %v378_v37  ;;  %v383_v40 = vsel %vm379_vm4, %v377_v36, %v381_v38 }
 0x44d   :  { %v384_v41 = vsel %vm380_vm5, %v378_v37, %v382_v39 }
 0x44e   :  { %v385_v42 = vpack.c.bf16 %v384_v41, %v383_v40 }
 0x450   :  { %816 = vmatmul.mubr.bf16.vlgmr.msra.gmra.mrb[4].mxu0 %v385_v42 }
 0x523   :  { %v491_v44 = vpop.f32.mrb[4].mxu0 }
 0x524   :  { %v492_v45 = vadd.f32 %v701_v43, %v491_v44  ;;  %v817_v46 = vpop.f32.mrb[5].mxu0 }
 0x525   :  { %v494_v47 = vpop.f32.mrb[6].mxu0 }
 0x526   :  { %v495_v48 = vadd.f32 %v701_v43, %v494_v47  ;;  %498 = vadd.xlane.f32.xlu0 %v492_v45  ;;  %v818_v49 = vpop.f32.mrb[7].mxu0 }
 0x528   :  { %500 = vadd.xlane.f32.xlu1 %v495_v48 }
 0x5b3   :  { %v499_v51 = vpop.xlane.xlu0 %498 }
 0x5b4   :  { %v502_v52 = vmul.f32 0.03125, %v499_v51 }
 0x5b5   :  { %v501_v53 = vpop.xlane.xlu1 %500 }
 0x5b6   :  { %v504_v54 = vsub.f32 %v492_v45, %v502_v52  ;;  %v503_v55 = vmul.f32 0.03125, %v501_v53 }
 0x5b8   :  { %v505_v56 = vsub.f32 %v495_v48, %v503_v55  ;;  %v506_v57 = vmul.f32 %v1027_v22, %v504_v54 }
 0x5ba   :  { %v508_v58 = vmul.f32 %v506_v57, %v506_v57  ;;  %v507_v59 = vmul.f32 %v1027_v22, %v505_v56  ;;  %v869_v22 = vld [vmem:[%s1171_s13 + $0x18] sm:$0xff]  }
 0x5bb   :  { %826 = vmatpush3.bf16.msra.mxu1 %v869_v22 }
 0x5bc   :  { %510 = vadd.xlane.f32.xlu0 %v508_v58  ;;  %v509_v60 = vmul.f32 %v507_v59, %v507_v59  ;;  %827 = vmatprep.subr.bf16.mxu1 %v894_v0 }
 0x5be   :  { %512 = vadd.xlane.f32.xlu1 %v509_v60 }
 0x5bf   :  { %828 = vmatpush3.bf16.msra.mxu1 %v870_v63 }
 0x5c0   :  { %829 = vmatprep.subr.bf16.mxu1 %v894_v0 }
 0x5c3   :  { %830 = vmatpush3.bf16.msra.mxu1 %v871_v1 }
 0x5c4   :  { %831 = vmatprep.subr.bf16.mxu1 %v894_v0 }
 0x5c7   :  { %832 = vmatpush3.bf16.msra.mxu1 %v872_v2 }
 0x5c8   :  { %833 = vmatprep.subr.bf16.mxu1 %v894_v0  ;;  %v711_v0 = vld [vmem:[%s1173_s12] ss:$0 sm:$0xff] }
 0x5cb   :  { %834 = vmatpush3.bf16.msra.mxu1 %v873_v3 }
 0x649   :  { %v511_v4 = vpop.xlane.xlu0 %510 }
 0x64a   :  { %v514_v5 = vmul.f32 0.03125, %v511_v4 }
 0x64b   :  { %v513_v6 = vpop.xlane.xlu1 %512 }
 0x64c   :  { %v516_v7 = vadd.f32 1e-05, %v514_v5  ;;  %v515_v8 = vmul.f32 0.03125, %v513_v6 }
 0x64e   :  { %882 = vrsqrt.f32 %v516_v7  ;;  %v517_v9 = vadd.f32 1e-05, %v515_v8 }
 0x650   :  { %884 = vrsqrt.f32 %v517_v9 }
 0x658   :  { %v883_v10 = vpop.eup %882 }
 0x659   :  { %v520_v12 = vmul.f32 %v883_v10, %v506_v57 }
 0x65a   :  { %v885_v13 = vpop.eup %884 }
 0x65b   :  { %v529_v14 = vmul.f32 %v710_v11, %v520_v12  ;;  %v521_v15 = vmul.f32 %v885_v13, %v507_v59 }
 0x65d   :  { %v530_v16 = vmul.f32 %v710_v11, %v521_v15  ;;  %v538_v17 = vadd.f32 %v711_v0, %v529_v14 }
 0x65f   :  { %v539_v18 = vadd.f32 %v711_v0, %v530_v16  ;;  %v542_v19 = vmul.f32 0.01, %v538_v17  ;;  %vm540_vm6 = vcmp.ge.f32.partialorder %v538_v17, 0.0 }
 0x661   :  { %vm541_vm7 = vcmp.ge.f32.partialorder %v539_v18, 0.0  ;;  %v543_v20 = vmul.f32 0.01, %v539_v18  ;;  %v544_v21 = vsel %vm540_vm6, %v538_v17, %v542_v19 }
 0x663   :  { %v545_v23 = vsel %vm541_vm7, %v539_v18, %v543_v20 }
 0x664   :  { %v546_v24 = vpack.c.bf16 %v545_v23, %v544_v21 }
 0x666   :  { %836 = vmatmul.mubr.bf16.vlgmr.msra.gmra.mrb[4].mxu1 %v546_v24 }
 0x739   :  { %v652_v26 = vpop.f32.mrb[4].mxu1 }
 0x73a   :  { %v653_v27 = vadd.f32 %v712_v25, %v652_v26  ;;  %v837_v28 = vpop.f32.mrb[5].mxu1 }
 0x73b   :  { %v655_v29 = vpop.f32.mrb[6].mxu1 }
 0x73c   :  { %v721_v30 = vmul.f32 -1.442695, %v653_v27  ;;  %v656_v31 = vadd.f32 %v712_v25, %v655_v29  ;;  %v838_v32 = vpop.f32.mrb[7].mxu1 }
 0x73e   :  { %886 = vpow2.f32 %v721_v30  ;;  %v722_v33 = vmul.f32 -1.442695, %v656_v31 }
 0x740   :  { %888 = vpow2.f32 %v722_v33 }
 0x748   :  { %v887_v34 = vpop.eup %886 }
 0x749   :  { %v665_v35 = vadd.f32 1.0, %v887_v34 }
 0x74a   :  { %v889_v36 = vpop.eup %888 }
 0x74b   :  { %890 = vrcp.f32 %v665_v35  ;;  %v666_v37 = vadd.f32 1.0, %v889_v36 }
 0x74d   :  { %892 = vrcp.f32 %v666_v37 }
 0x755   :  { %v891_v38 = vpop.eup %890 }
 0x756   :  { %671 = vst [vmem:[%s1175_s15] sm:$0xff] %v891_v38 }
 0x757   :  { %v893_v39 = vpop.eup %892 }
 0x758   :  { %672 = vst [vmem:[%s1175_s15 + $0x8] sm:$0xff] %v893_v39 }

</bundles_post_ra>
